<compile_context>
chip_gen: v7x
topology: tpu7x:2x2x1
jax: 0.10.0
libtpu: 0.0.40
codegen_flags: <defaults>
</compile_context>

<pallas_src>
import functools

import numpy as np
import jax
import jax.numpy as jnp
from jax import lax
from jax.experimental import pallas as pl
from jax.experimental.pallas import tpu as pltpu

_EPS = 1e-5


# ----------------------------- in-kernel helpers -----------------------------

def _batchnorm(v, gamma, beta, count):
    """One-pass training-mode BatchNorm2d on a batch-fused (C, N*S) f32 map.

    Per-channel mean / biased variance over batch + spatial in a single pass
    (var = E[x^2] - mean^2), then a fused scale/shift apply.
    """
    s1 = jnp.sum(v, axis=1, keepdims=True)            # (C, 1)
    s2 = jnp.sum(v * v, axis=1, keepdims=True)        # (C, 1)
    inv_n = 1.0 / count
    mean = s1 * inv_n
    var = s2 * inv_n - mean * mean                    # biased variance
    scale = gamma * lax.rsqrt(var + _EPS)             # (C, 1)
    shift = beta - mean * scale                       # (C, 1)
    return v * scale + shift                          # one broadcasted FMA-style apply


def _conv3x3_relu(v, w2d, masks, slab_ref, *, cin, W, L):
    """3x3 same-conv + ReLU on the batch-fused (cin, L = N*S) f32 map `v`.

    v:        (cin, L) f32.
    w2d:      (cout, 9*cin) bf16, tap-major (k = dy*3 + dx) along the 9*cin axis.
    masks:    (9, L) f32 per-tap validity masks (1.0 where the 3x3 tap reads an
              in-bounds pixel of the SAME sample, 0.0 otherwise).
    slab_ref: (>= 9*cin, L) bf16 im2col scratch.
    """
    for k in range(9):
        dy, dx = divmod(k, 3)
        d = (dy - 1) * W + (dx - 1)                   # flat spatial shift of this tap
        if d == 0:                                    # center tap: identity, mask all-ones
            blk = v
        else:
            # Lane-roll the whole batch-fused map; the mask zeroes every
            # position whose rolled read would be out-of-image or cross-sample.
            blk = pltpu.roll(v, shift=(-d) % L, axis=1) * masks[k:k + 1, :]
        slab_ref[k * cin:(k + 1) * cin, :] = blk.astype(jnp.bfloat16)
    acc = jnp.dot(w2d, slab_ref[0:9 * cin, :],        # single MXU matmul, f32 acc
                  preferred_element_type=jnp.float32)
    return jnp.maximum(acc, 0.0)


def _esn_body(x_ref, w1_ref, w2_ref, masks_ref, g_ref, b_ref,
              gpre_ref, bpre_ref, o_ref, slab_ref, *, W, first):
    N, C, S = x_ref.shape
    CMID = w1_ref.shape[0]
    L = N * S

    # Fuse the batch onto the lane axis: (C, N*S).  N is tiny; lane-aligned copies.
    x = jnp.concatenate([x_ref[n] for n in range(N)], axis=1)
    resid = x

    masks = masks_ref[...]                            # (9, L) f32, loaded once

    h = x if first else _batchnorm(x, gpre_ref[...], bpre_ref[...], L)
    h = _conv3x3_relu(h, w1_ref[...], masks, slab_ref, cin=C, W=W, L=L)
    h = _batchnorm(h, g_ref[...], b_ref[...], L)
    y = _conv3x3_relu(h, w2_ref[...], masks, slab_ref, cin=CMID, W=W, L=L)

    out = y + resid
    for n in range(N):
        o_ref[n] = out[:, n * S:(n + 1) * S]          # lane-dense per-sample store


def _esn_kernel_prebn(x_ref, w1_ref, w2_ref, masks_ref, g_ref, b_ref,
                      gpre_ref, bpre_ref, o_ref, slab_ref, *, W):
    _esn_body(x_ref, w1_ref, w2_ref, masks_ref, g_ref, b_ref,
              gpre_ref, bpre_ref, o_ref, slab_ref, W=W, first=False)


def _esn_kernel_first(x_ref, w1_ref, w2_ref, masks_ref, g_ref, b_ref,
                      o_ref, slab_ref, *, W):
    _esn_body(x_ref, w1_ref, w2_ref, masks_ref, g_ref, b_ref,
              None, None, o_ref, slab_ref, W=W, first=True)


# ----------------------------- wrapper ---------------------------------------

def esn_res_block(x_nchw, params, first=False):
    """ESNResBlock forward.  x_nchw: (N, C, H, W) float32 -> (N, C, H, W) f32."""
    N, C, H, W = x_nchw.shape
    S = H * W
    CMID = params["w1"].shape[0]

    x = x_nchw.reshape(N, C, S).astype(jnp.float32)   # free reshape, no transpose

    # Host-precomputed per-tap validity masks on the flattened spatial axis
    # (tiled over the batch-fused lane axis).  Tap k = dy*3 + dx reads pixel
    # (row+dy-1, col+dx-1); mask is 1 iff that pixel is inside the image.
    row = np.arange(S) // W
    col = np.arange(S) % W
    m = np.zeros((9, S), np.float32)
    for k in range(9):
        dy, dx = divmod(k, 3)
        m[k] = ((row + dy - 1 >= 0) & (row + dy - 1 < H) &
                (col + dx - 1 >= 0) & (col + dx - 1 < W)).astype(np.float32)
    masks = jnp.asarray(np.tile(m, (1, N)))           # (9, N*S) f32

    inputs = [x, params["w1"], params["w2"], masks, params["gamma"], params["beta"]]
    if first:
        kernel = functools.partial(_esn_kernel_first, W=W)
    else:
        inputs += [params["gamma_pre"], params["beta_pre"]]
        kernel = functools.partial(_esn_kernel_prebn, W=W)

    vmem = pl.BlockSpec(memory_space=pltpu.MemorySpace.VMEM)
    out = pl.pallas_call(
        kernel,
        out_shape=jax.ShapeDtypeStruct((N, C, S), jnp.float32),
        in_specs=[vmem] * len(inputs),
        out_specs=vmem,
        scratch_shapes=[
            pltpu.VMEM((9 * max(C, CMID), N * S), jnp.bfloat16),  # shared im2col slab
        ],
        # TODO(synk): for non-toy N / H*W, tile over N with a grid + "parallel"
        # dimension_semantics (v7x has 2 TensorCores, 64 MiB VMEM) and a
        # two-phase BN (stats pass + apply pass), plus
        # pltpu.CompilerParams(vmem_limit_bytes=...).
    )(*inputs)

    return out.reshape(N, C, H, W)


# ----------------------------- pure-JAX reference ----------------------------

def esn_res_block_ref(x_nchw, w1_pt, w2_pt, g_pre, b_pre, g_mid, b_mid, first=False):
    """Pure-XLA reference (PyTorch OIHW weights, NCHW activations).  Conv
    operands are rounded to bf16 with f32 accumulation to match the kernel's
    MXU numerics; BN / ReLU / residual stay in f32."""
    def bn(v, g, b):
        mn = jnp.mean(v, axis=(0, 2, 3), keepdims=True)
        var = jnp.mean((v - mn) ** 2, axis=(0, 2, 3), keepdims=True)
        return ((v - mn) * lax.rsqrt(var + _EPS) * g.reshape(1, -1, 1, 1)
                + b.reshape(1, -1, 1, 1))

    def conv(v, w):
        return lax.conv_general_dilated(
            v.astype(jnp.bfloat16), w.astype(jnp.bfloat16),
            window_strides=(1, 1), padding=((1, 1), (1, 1)),
            dimension_numbers=("NCHW", "OIHW", "NCHW"),
            preferred_element_type=jnp.float32)

    residual = x_nchw
    h = x_nchw if first else bn(x_nchw, g_pre, b_pre)
    h = jnp.maximum(conv(h, w1_pt), 0.0)
    h = bn(h, g_mid, b_mid)
    h = jnp.maximum(conv(h, w2_pt), 0.0)
    return h + residual


# ----------------------------- main -------------------------------------------

if __name__ == "__main__":
    key = jax.random.PRNGKey(0)
    N, C, CMID = 2, 4, 8                      # in_out_channels=4, mid_channels=8
    ks = jax.random.split(key, 7)

    # PyTorch Conv2d weight layout: (out, in, kh, kw).
    w1_pt = 0.1 * jax.random.normal(ks[1], (CMID, C, 3, 3), jnp.float32)
    w2_pt = 0.1 * jax.random.normal(ks[2], (C, CMID, 3, 3), jnp.float32)
    g_pre = 1.0 + 0.1 * jax.random.normal(ks[3], (C,), jnp.float32)
    b_pre = 0.1 * jax.random.normal(ks[4], (C,), jnp.float32)
    g_mid = 1.0 + 0.1 * jax.random.normal(ks[5], (CMID,), jnp.float32)
    b_mid = 0.1 * jax.random.normal(ks[6], (CMID,), jnp.float32)

    # Kernel-side parameter layout: 2-D tap-major (cout, 9*cin) bf16 conv
    # weights (pairs directly with the im2col matmul), (C, 1) f32 BN params.
    params = dict(
        w1=jnp.transpose(w1_pt, (0, 2, 3, 1)).reshape(CMID, 9 * C).astype(jnp.bfloat16),
        w2=jnp.transpose(w2_pt, (0, 2, 3, 1)).reshape(C, 9 * CMID).astype(jnp.bfloat16),
        gamma_pre=g_pre.reshape(C, 1), beta_pre=b_pre.reshape(C, 1),
        gamma=g_mid.reshape(CMID, 1), beta=b_mid.reshape(CMID, 1),
    )

    run = jax.jit(esn_res_block, static_argnames=("first",))

    ok = True
    # Second shape has W != H to exercise the border-tap masks asymmetrically.
    for (H, W) in ((16, 16), (16, 8)):
        x = jax.random.normal(ks[0], (N, C, H, W), jnp.float32)
        for first in (False, True):
            out = jax.block_until_ready(run(x, params, first=first))
            ref = jax.block_until_ready(
                esn_res_block_ref(x, w1_pt, w2_pt, g_pre, b_pre, g_mid, b_mid,
                                  first=first))
            assert out.shape == x.shape and out.dtype == jnp.float32
            # Both sides use bf16 conv operands with f32 accumulation; agreement
            # is typically ~1e-5.  1e-2 absorbs rare round-to-bf16 boundary
            # flips while still catching any wrong boundary tap (error ~0.1).
            ok &= bool(jnp.allclose(out, ref, rtol=1e-2, atol=1e-2))
    assert ok, "kernel does not match reference"
    print("KERNEL_OK")
</pallas_src>

<mosaic_0001>
module attributes {stable_mosaic.version = 11 : i64} {
  func.func @_esn_kernel_prebn(%arg0: memref<2x4x256xf32, #tpu.memory_space<vmem>>, %arg1: memref<8x36xbf16, #tpu.memory_space<vmem>>, %arg2: memref<4x72xbf16, #tpu.memory_space<vmem>>, %arg3: memref<9x512xf32, #tpu.memory_space<vmem>>, %arg4: memref<8x1xf32, #tpu.memory_space<vmem>>, %arg5: memref<8x1xf32, #tpu.memory_space<vmem>>, %arg6: memref<4x1xf32, #tpu.memory_space<vmem>>, %arg7: memref<4x1xf32, #tpu.memory_space<vmem>>, %arg8: memref<2x4x256xf32, #tpu.memory_space<vmem>>, %arg9: memref<72x512xbf16, #tpu.memory_space<vmem>>) attributes {dimension_semantics = [], scalar_prefetch = 0 : i64, scratch_operands = 1 : i64, tpu.core_type = #tpu.core_type<tc>} {
    %c0 = arith.constant 0 : index
    %c0_0 = arith.constant 0 : index
    %c0_1 = arith.constant 0 : index
    %0 = vector.load %arg0[%c0, %c0_0, %c0_1] : memref<2x4x256xf32, #tpu.memory_space<vmem>>, vector<1x4x256xf32>
    %1 = vector.shape_cast %0 : vector<1x4x256xf32> to vector<4x256xf32>
    %c1 = arith.constant 1 : index
    %c0_2 = arith.constant 0 : index
    %c0_3 = arith.constant 0 : index
    %2 = vector.load %arg0[%c1, %c0_2, %c0_3] : memref<2x4x256xf32, #tpu.memory_space<vmem>>, vector<1x4x256xf32>
    %3 = vector.shape_cast %2 : vector<1x4x256xf32> to vector<4x256xf32>
    %4 = tpu.concatenate %1, %3 in 1 : vector<4x256xf32>, vector<4x256xf32> -> vector<4x512xf32>
    %c0_4 = arith.constant 0 : index
    %c0_5 = arith.constant 0 : index
    %5 = vector.load %arg3[%c0_4, %c0_5] : memref<9x512xf32, #tpu.memory_space<vmem>>, vector<9x512xf32>
    %c0_6 = arith.constant 0 : index
    %c0_7 = arith.constant 0 : index
    %6 = vector.load %arg6[%c0_6, %c0_7] : memref<4x1xf32, #tpu.memory_space<vmem>>, vector<4x1xf32>
    %c0_8 = arith.constant 0 : index
    %c0_9 = arith.constant 0 : index
    %7 = vector.load %arg7[%c0_8, %c0_9] : memref<4x1xf32, #tpu.memory_space<vmem>>, vector<4x1xf32>
    %cst = arith.constant dense<0.000000e+00> : vector<4xf32>
    %8 = vector.multi_reduction <add>, %4, %cst [1] : vector<4x512xf32> to vector<4xf32>
    %9 = vector.shape_cast %8 : vector<4xf32> to vector<4x1xf32>
    %10 = arith.mulf %4, %4 : vector<4x512xf32>
    %cst_10 = arith.constant dense<0.000000e+00> : vector<4xf32>
    %11 = vector.multi_reduction <add>, %10, %cst_10 [1] : vector<4x512xf32> to vector<4xf32>
    %12 = vector.shape_cast %11 : vector<4xf32> to vector<4x1xf32>
    %cst_11 = arith.constant 0.001953125 : f32
    %13 = vector.broadcast %cst_11 : f32 to vector<4x1xf32>
    %14 = arith.mulf %9, %13 : vector<4x1xf32>
    %cst_12 = arith.constant 0.001953125 : f32
    %15 = vector.broadcast %cst_12 : f32 to vector<4x1xf32>
    %16 = arith.mulf %12, %15 : vector<4x1xf32>
    %17 = arith.mulf %14, %14 : vector<4x1xf32>
    %18 = arith.subf %16, %17 : vector<4x1xf32>
    %cst_13 = arith.constant 9.99999974E-6 : f32
    %19 = vector.broadcast %cst_13 : f32 to vector<4x1xf32>
    %20 = arith.addf %18, %19 : vector<4x1xf32>
    %21 = math.rsqrt %20 : vector<4x1xf32>
    %22 = arith.mulf %6, %21 : vector<4x1xf32>
    %23 = arith.mulf %14, %22 : vector<4x1xf32>
    %24 = arith.subf %7, %23 : vector<4x1xf32>
    %25 = vector.broadcast %22 : vector<4x1xf32> to vector<4x512xf32>
    %26 = arith.mulf %4, %25 : vector<4x512xf32>
    %27 = vector.broadcast %24 : vector<4x1xf32> to vector<4x512xf32>
    %28 = arith.addf %26, %27 : vector<4x512xf32>
    %c0_14 = arith.constant 0 : index
    %c0_15 = arith.constant 0 : index
    %29 = vector.load %arg1[%c0_14, %c0_15] : memref<8x36xbf16, #tpu.memory_space<vmem>>, vector<8x36xbf16>
    %c17_i32 = arith.constant 17 : i32
    %30 = tpu.dynamic_rotate %28 by %c17_i32 dim 1 : vector<4x512xf32>, i32 -> vector<4x512xf32>
    %31 = vector.extract_strided_slice %5 {offsets = [0, 0], sizes = [1, 512], strides = [1, 1]} : vector<9x512xf32> to vector<1x512xf32>
    %32 = vector.broadcast %31 : vector<1x512xf32> to vector<4x512xf32>
    %33 = arith.mulf %30, %32 : vector<4x512xf32>
    %34 = arith.truncf %33 : vector<4x512xf32> to vector<4x512xbf16>
    %c0_16 = arith.constant 0 : index
    %c0_17 = arith.constant 0 : index
    %35 = vector.load %arg9[%c0_16, %c0_17] : memref<72x512xbf16, #tpu.memory_space<vmem>>, vector<4x512xbf16>
    tpu.vector_store %arg9[%c0_16, %c0_17], %34 {strides = array<i32>} : memref<72x512xbf16, #tpu.memory_space<vmem>>, vector<4x512xbf16>,
    %c16_i32 = arith.constant 16 : i32
    %36 = tpu.dynamic_rotate %28 by %c16_i32 dim 1 : vector<4x512xf32>, i32 -> vector<4x512xf32>
    %37 = vector.extract_strided_slice %5 {offsets = [1, 0], sizes = [1, 512], strides = [1, 1]} : vector<9x512xf32> to vector<1x512xf32>
    %38 = vector.broadcast %37 : vector<1x512xf32> to vector<4x512xf32>
    %39 = arith.mulf %36, %38 : vector<4x512xf32>
    %40 = arith.truncf %39 : vector<4x512xf32> to vector<4x512xbf16>
    %c4 = arith.constant 4 : index
    %c0_18 = arith.constant 0 : index
    %41 = vector.load %arg9[%c4, %c0_18] : memref<72x512xbf16, #tpu.memory_space<vmem>>, vector<4x512xbf16>
    tpu.vector_store %arg9[%c4, %c0_18], %40 {strides = array<i32>} : memref<72x512xbf16, #tpu.memory_space<vmem>>, vector<4x512xbf16>,
    %c15_i32 = arith.constant 15 : i32
    %42 = tpu.dynamic_rotate %28 by %c15_i32 dim 1 : vector<4x512xf32>, i32 -> vector<4x512xf32>
    %43 = vector.extract_strided_slice %5 {offsets = [2, 0], sizes = [1, 512], strides = [1, 1]} : vector<9x512xf32> to vector<1x512xf32>
    %44 = vector.broadcast %43 : vector<1x512xf32> to vector<4x512xf32>
    %45 = arith.mulf %42, %44 : vector<4x512xf32>
    %46 = arith.truncf %45 : vector<4x512xf32> to vector<4x512xbf16>
    %c8 = arith.constant 8 : index
    %c0_19 = arith.constant 0 : index
    %47 = vector.load %arg9[%c8, %c0_19] : memref<72x512xbf16, #tpu.memory_space<vmem>>, vector<4x512xbf16>
    tpu.vector_store %arg9[%c8, %c0_19], %46 {strides = array<i32>} : memref<72x512xbf16, #tpu.memory_space<vmem>>, vector<4x512xbf16>,
    %c1_i32 = arith.constant 1 : i32
    %48 = tpu.dynamic_rotate %28 by %c1_i32 dim 1 : vector<4x512xf32>, i32 -> vector<4x512xf32>
    %49 = vector.extract_strided_slice %5 {offsets = [3, 0], sizes = [1, 512], strides = [1, 1]} : vector<9x512xf32> to vector<1x512xf32>
    %50 = vector.broadcast %49 : vector<1x512xf32> to vector<4x512xf32>
    %51 = arith.mulf %48, %50 : vector<4x512xf32>
    %52 = arith.truncf %51 : vector<4x512xf32> to vector<4x512xbf16>
    %c12 = arith.constant 12 : index
    %c0_20 = arith.constant 0 : index
    %53 = vector.load %arg9[%c12, %c0_20] : memref<72x512xbf16, #tpu.memory_space<vmem>>, vector<4x512xbf16>
    tpu.vector_store %arg9[%c12, %c0_20], %52 {strides = array<i32>} : memref<72x512xbf16, #tpu.memory_space<vmem>>, vector<4x512xbf16>,
    %54 = arith.truncf %28 : vector<4x512xf32> to vector<4x512xbf16>
    %c16 = arith.constant 16 : index
    %c0_21 = arith.constant 0 : index
    %55 = vector.load %arg9[%c16, %c0_21] : memref<72x512xbf16, #tpu.memory_space<vmem>>, vector<4x512xbf16>
    tpu.vector_store %arg9[%c16, %c0_21], %54 {strides = array<i32>} : memref<72x512xbf16, #tpu.memory_space<vmem>>, vector<4x512xbf16>,
    %c511_i32 = arith.constant 511 : i32
    %56 = tpu.dynamic_rotate %28 by %c511_i32 dim 1 : vector<4x512xf32>, i32 -> vector<4x512xf32>
    %57 = vector.extract_strided_slice %5 {offsets = [5, 0], sizes = [1, 512], strides = [1, 1]} : vector<9x512xf32> to vector<1x512xf32>
    %58 = vector.broadcast %57 : vector<1x512xf32> to vector<4x512xf32>
    %59 = arith.mulf %56, %58 : vector<4x512xf32>
    %60 = arith.truncf %59 : vector<4x512xf32> to vector<4x512xbf16>
    %c20 = arith.constant 20 : index
    %c0_22 = arith.constant 0 : index
    %61 = vector.load %arg9[%c20, %c0_22] : memref<72x512xbf16, #tpu.memory_space<vmem>>, vector<4x512xbf16>
    tpu.vector_store %arg9[%c20, %c0_22], %60 {strides = array<i32>} : memref<72x512xbf16, #tpu.memory_space<vmem>>, vector<4x512xbf16>,
    %c497_i32 = arith.constant 497 : i32
    %62 = tpu.dynamic_rotate %28 by %c497_i32 dim 1 : vector<4x512xf32>, i32 -> vector<4x512xf32>
    %63 = vector.extract_strided_slice %5 {offsets = [6, 0], sizes = [1, 512], strides = [1, 1]} : vector<9x512xf32> to vector<1x512xf32>
    %64 = vector.broadcast %63 : vector<1x512xf32> to vector<4x512xf32>
    %65 = arith.mulf %62, %64 : vector<4x512xf32>
    %66 = arith.truncf %65 : vector<4x512xf32> to vector<4x512xbf16>
    %c24 = arith.constant 24 : index
    %c0_23 = arith.constant 0 : index
    %67 = vector.load %arg9[%c24, %c0_23] : memref<72x512xbf16, #tpu.memory_space<vmem>>, vector<4x512xbf16>
    tpu.vector_store %arg9[%c24, %c0_23], %66 {strides = array<i32>} : memref<72x512xbf16, #tpu.memory_space<vmem>>, vector<4x512xbf16>,
    %c496_i32 = arith.constant 496 : i32
    %68 = tpu.dynamic_rotate %28 by %c496_i32 dim 1 : vector<4x512xf32>, i32 -> vector<4x512xf32>
    %69 = vector.extract_strided_slice %5 {offsets = [7, 0], sizes = [1, 512], strides = [1, 1]} : vector<9x512xf32> to vector<1x512xf32>
    %70 = vector.broadcast %69 : vector<1x512xf32> to vector<4x512xf32>
    %71 = arith.mulf %68, %70 : vector<4x512xf32>
    %72 = arith.truncf %71 : vector<4x512xf32> to vector<4x512xbf16>
    %c28 = arith.constant 28 : index
    %c0_24 = arith.constant 0 : index
    %73 = vector.load %arg9[%c28, %c0_24] : memref<72x512xbf16, #tpu.memory_space<vmem>>, vector<4x512xbf16>
    tpu.vector_store %arg9[%c28, %c0_24], %72 {strides = array<i32>} : memref<72x512xbf16, #tpu.memory_space<vmem>>, vector<4x512xbf16>,
    %c495_i32 = arith.constant 495 : i32
    %74 = tpu.dynamic_rotate %28 by %c495_i32 dim 1 : vector<4x512xf32>, i32 -> vector<4x512xf32>
    %75 = vector.extract_strided_slice %5 {offsets = [8, 0], sizes = [1, 512], strides = [1, 1]} : vector<9x512xf32> to vector<1x512xf32>
    %76 = vector.broadcast %75 : vector<1x512xf32> to vector<4x512xf32>
    %77 = arith.mulf %74, %76 : vector<4x512xf32>
    %78 = arith.truncf %77 : vector<4x512xf32> to vector<4x512xbf16>
    %c32 = arith.constant 32 : index
    %c0_25 = arith.constant 0 : index
    %79 = vector.load %arg9[%c32, %c0_25] : memref<72x512xbf16, #tpu.memory_space<vmem>>, vector<4x512xbf16>
    tpu.vector_store %arg9[%c32, %c0_25], %78 {strides = array<i32>} : memref<72x512xbf16, #tpu.memory_space<vmem>>, vector<4x512xbf16>,
    %c0_26 = arith.constant 0 : index
    %c0_27 = arith.constant 0 : index
    %80 = vector.load %arg9[%c0_26, %c0_27] : memref<72x512xbf16, #tpu.memory_space<vmem>>, vector<36x512xbf16>
    %cst_28 = arith.constant dense<0.000000e+00> : vector<8x512xf32>
    %81 = tpu.matmul %29, %80, %cst_28 {dimension_numbers = #tpu.dot_dimension_numbers<[1], [0], [0], [1], [0, 0, 1, 1], [], []>} : vector<8x36xbf16>, vector<36x512xbf16>, vector<8x512xf32> -> vector<8x512xf32>
    %cst_29 = arith.constant 0.000000e+00 : f32
    %82 = vector.broadcast %cst_29 : f32 to vector<8x512xf32>
    %83 = arith.maximumf %81, %82 : vector<8x512xf32>
    %c0_30 = arith.constant 0 : index
    %c0_31 = arith.constant 0 : index
    %84 = vector.load %arg4[%c0_30, %c0_31] : memref<8x1xf32, #tpu.memory_space<vmem>>, vector<8x1xf32>
    %c0_32 = arith.constant 0 : index
    %c0_33 = arith.constant 0 : index
    %85 = vector.load %arg5[%c0_32, %c0_33] : memref<8x1xf32, #tpu.memory_space<vmem>>, vector<8x1xf32>
    %cst_34 = arith.constant dense<0.000000e+00> : vector<8xf32>
    %86 = vector.multi_reduction <add>, %83, %cst_34 [1] : vector<8x512xf32> to vector<8xf32>
    %87 = vector.shape_cast %86 : vector<8xf32> to vector<8x1xf32>
    %88 = arith.mulf %83, %83 : vector<8x512xf32>
    %cst_35 = arith.constant dense<0.000000e+00> : vector<8xf32>
    %89 = vector.multi_reduction <add>, %88, %cst_35 [1] : vector<8x512xf32> to vector<8xf32>
    %90 = vector.shape_cast %89 : vector<8xf32> to vector<8x1xf32>
    %cst_36 = arith.constant 0.001953125 : f32
    %91 = vector.broadcast %cst_36 : f32 to vector<8x1xf32>
    %92 = arith.mulf %87, %91 : vector<8x1xf32>
    %cst_37 = arith.constant 0.001953125 : f32
    %93 = vector.broadcast %cst_37 : f32 to vector<8x1xf32>
    %94 = arith.mulf %90, %93 : vector<8x1xf32>
    %95 = arith.mulf %92, %92 : vector<8x1xf32>
    %96 = arith.subf %94, %95 : vector<8x1xf32>
    %cst_38 = arith.constant 9.99999974E-6 : f32
    %97 = vector.broadcast %cst_38 : f32 to vector<8x1xf32>
    %98 = arith.addf %96, %97 : vector<8x1xf32>
    %99 = math.rsqrt %98 : vector<8x1xf32>
    %100 = arith.mulf %84, %99 : vector<8x1xf32>
    %101 = arith.mulf %92, %100 : vector<8x1xf32>
    %102 = arith.subf %85, %101 : vector<8x1xf32>
    %103 = vector.broadcast %100 : vector<8x1xf32> to vector<8x512xf32>
    %104 = arith.mulf %83, %103 : vector<8x512xf32>
    %105 = vector.broadcast %102 : vector<8x1xf32> to vector<8x512xf32>
    %106 = arith.addf %104, %105 : vector<8x512xf32>
    %c0_39 = arith.constant 0 : index
    %c0_40 = arith.constant 0 : index
    %107 = vector.load %arg2[%c0_39, %c0_40] : memref<4x72xbf16, #tpu.memory_space<vmem>>, vector<4x72xbf16>
    %c17_i32_41 = arith.constant 17 : i32
    %108 = tpu.dynamic_rotate %106 by %c17_i32_41 dim 1 : vector<8x512xf32>, i32 -> vector<8x512xf32>
    %109 = vector.extract_strided_slice %5 {offsets = [0, 0], sizes = [1, 512], strides = [1, 1]} : vector<9x512xf32> to vector<1x512xf32>
    %110 = vector.broadcast %109 : vector<1x512xf32> to vector<8x512xf32>
    %111 = arith.mulf %108, %110 : vector<8x512xf32>
    %112 = arith.truncf %111 : vector<8x512xf32> to vector<8x512xbf16>
    %c0_42 = arith.constant 0 : index
    %c0_43 = arith.constant 0 : index
    %113 = vector.load %arg9[%c0_42, %c0_43] : memref<72x512xbf16, #tpu.memory_space<vmem>>, vector<8x512xbf16>
    tpu.vector_store %arg9[%c0_42, %c0_43], %112 {strides = array<i32>} : memref<72x512xbf16, #tpu.memory_space<vmem>>, vector<8x512xbf16>,
    %c16_i32_44 = arith.constant 16 : i32
    %114 = tpu.dynamic_rotate %106 by %c16_i32_44 dim 1 : vector<8x512xf32>, i32 -> vector<8x512xf32>
    %115 = vector.extract_strided_slice %5 {offsets = [1, 0], sizes = [1, 512], strides = [1, 1]} : vector<9x512xf32> to vector<1x512xf32>
    %116 = vector.broadcast %115 : vector<1x512xf32> to vector<8x512xf32>
    %117 = arith.mulf %114, %116 : vector<8x512xf32>
    %118 = arith.truncf %117 : vector<8x512xf32> to vector<8x512xbf16>
    %c8_45 = arith.constant 8 : index
    %c0_46 = arith.constant 0 : index
    %119 = vector.load %arg9[%c8_45, %c0_46] : memref<72x512xbf16, #tpu.memory_space<vmem>>, vector<8x512xbf16>
    tpu.vector_store %arg9[%c8_45, %c0_46], %118 {strides = array<i32>} : memref<72x512xbf16, #tpu.memory_space<vmem>>, vector<8x512xbf16>,
    %c15_i32_47 = arith.constant 15 : i32
    %120 = tpu.dynamic_rotate %106 by %c15_i32_47 dim 1 : vector<8x512xf32>, i32 -> vector<8x512xf32>
    %121 = vector.extract_strided_slice %5 {offsets = [2, 0], sizes = [1, 512], strides = [1, 1]} : vector<9x512xf32> to vector<1x512xf32>
    %122 = vector.broadcast %121 : vector<1x512xf32> to vector<8x512xf32>
    %123 = arith.mulf %120, %122 : vector<8x512xf32>
    %124 = arith.truncf %123 : vector<8x512xf32> to vector<8x512xbf16>
    %c16_48 = arith.constant 16 : index
    %c0_49 = arith.constant 0 : index
    %125 = vector.load %arg9[%c16_48, %c0_49] : memref<72x512xbf16, #tpu.memory_space<vmem>>, vector<8x512xbf16>
    tpu.vector_store %arg9[%c16_48, %c0_49], %124 {strides = array<i32>} : memref<72x512xbf16, #tpu.memory_space<vmem>>, vector<8x512xbf16>,
    %c1_i32_50 = arith.constant 1 : i32
    %126 = tpu.dynamic_rotate %106 by %c1_i32_50 dim 1 : vector<8x512xf32>, i32 -> vector<8x512xf32>
    %127 = vector.extract_strided_slice %5 {offsets = [3, 0], sizes = [1, 512], strides = [1, 1]} : vector<9x512xf32> to vector<1x512xf32>
    %128 = vector.broadcast %127 : vector<1x512xf32> to vector<8x512xf32>
    %129 = arith.mulf %126, %128 : vector<8x512xf32>
    %130 = arith.truncf %129 : vector<8x512xf32> to vector<8x512xbf16>
    %c24_51 = arith.constant 24 : index
    %c0_52 = arith.constant 0 : index
    %131 = vector.load %arg9[%c24_51, %c0_52] : memref<72x512xbf16, #tpu.memory_space<vmem>>, vector<8x512xbf16>
    tpu.vector_store %arg9[%c24_51, %c0_52], %130 {strides = array<i32>} : memref<72x512xbf16, #tpu.memory_space<vmem>>, vector<8x512xbf16>,
    %132 = arith.truncf %106 : vector<8x512xf32> to vector<8x512xbf16>
    %c32_53 = arith.constant 32 : index
    %c0_54 = arith.constant 0 : index
    %133 = vector.load %arg9[%c32_53, %c0_54] : memref<72x512xbf16, #tpu.memory_space<vmem>>, vector<8x512xbf16>
    tpu.vector_store %arg9[%c32_53, %c0_54], %132 {strides = array<i32>} : memref<72x512xbf16, #tpu.memory_space<vmem>>, vector<8x512xbf16>,
    %c511_i32_55 = arith.constant 511 : i32
    %134 = tpu.dynamic_rotate %106 by %c511_i32_55 dim 1 : vector<8x512xf32>, i32 -> vector<8x512xf32>
    %135 = vector.extract_strided_slice %5 {offsets = [5, 0], sizes = [1, 512], strides = [1, 1]} : vector<9x512xf32> to vector<1x512xf32>
    %136 = vector.broadcast %135 : vector<1x512xf32> to vector<8x512xf32>
    %137 = arith.mulf %134, %136 : vector<8x512xf32>
    %138 = arith.truncf %137 : vector<8x512xf32> to vector<8x512xbf16>
    %c40 = arith.constant 40 : index
    %c0_56 = arith.constant 0 : index
    %139 = vector.load %arg9[%c40, %c0_56] : memref<72x512xbf16, #tpu.memory_space<vmem>>, vector<8x512xbf16>
    tpu.vector_store %arg9[%c40, %c0_56], %138 {strides = array<i32>} : memref<72x512xbf16, #tpu.memory_space<vmem>>, vector<8x512xbf16>,
    %c497_i32_57 = arith.constant 497 : i32
    %140 = tpu.dynamic_rotate %106 by %c497_i32_57 dim 1 : vector<8x512xf32>, i32 -> vector<8x512xf32>
    %141 = vector.extract_strided_slice %5 {offsets = [6, 0], sizes = [1, 512], strides = [1, 1]} : vector<9x512xf32> to vector<1x512xf32>
    %142 = vector.broadcast %141 : vector<1x512xf32> to vector<8x512xf32>
    %143 = arith.mulf %140, %142 : vector<8x512xf32>
    %144 = arith.truncf %143 : vector<8x512xf32> to vector<8x512xbf16>
    %c48 = arith.constant 48 : index
    %c0_58 = arith.constant 0 : index
    %145 = vector.load %arg9[%c48, %c0_58] : memref<72x512xbf16, #tpu.memory_space<vmem>>, vector<8x512xbf16>
    tpu.vector_store %arg9[%c48, %c0_58], %144 {strides = array<i32>} : memref<72x512xbf16, #tpu.memory_space<vmem>>, vector<8x512xbf16>,
    %c496_i32_59 = arith.constant 496 : i32
    %146 = tpu.dynamic_rotate %106 by %c496_i32_59 dim 1 : vector<8x512xf32>, i32 -> vector<8x512xf32>
    %147 = vector.extract_strided_slice %5 {offsets = [7, 0], sizes = [1, 512], strides = [1, 1]} : vector<9x512xf32> to vector<1x512xf32>
    %148 = vector.broadcast %147 : vector<1x512xf32> to vector<8x512xf32>
    %149 = arith.mulf %146, %148 : vector<8x512xf32>
    %150 = arith.truncf %149 : vector<8x512xf32> to vector<8x512xbf16>
    %c56 = arith.constant 56 : index
    %c0_60 = arith.constant 0 : index
    %151 = vector.load %arg9[%c56, %c0_60] : memref<72x512xbf16, #tpu.memory_space<vmem>>, vector<8x512xbf16>
    tpu.vector_store %arg9[%c56, %c0_60], %150 {strides = array<i32>} : memref<72x512xbf16, #tpu.memory_space<vmem>>, vector<8x512xbf16>,
    %c495_i32_61 = arith.constant 495 : i32
    %152 = tpu.dynamic_rotate %106 by %c495_i32_61 dim 1 : vector<8x512xf32>, i32 -> vector<8x512xf32>
    %153 = vector.extract_strided_slice %5 {offsets = [8, 0], sizes = [1, 512], strides = [1, 1]} : vector<9x512xf32> to vector<1x512xf32>
    %154 = vector.broadcast %153 : vector<1x512xf32> to vector<8x512xf32>
    %155 = arith.mulf %152, %154 : vector<8x512xf32>
    %156 = arith.truncf %155 : vector<8x512xf32> to vector<8x512xbf16>
    %c64 = arith.constant 64 : index
    %c0_62 = arith.constant 0 : index
    %157 = vector.load %arg9[%c64, %c0_62] : memref<72x512xbf16, #tpu.memory_space<vmem>>, vector<8x512xbf16>
    tpu.vector_store %arg9[%c64, %c0_62], %156 {strides = array<i32>} : memref<72x512xbf16, #tpu.memory_space<vmem>>, vector<8x512xbf16>,
    %c0_63 = arith.constant 0 : index
    %c0_64 = arith.constant 0 : index
    %158 = vector.load %arg9[%c0_63, %c0_64] : memref<72x512xbf16, #tpu.memory_space<vmem>>, vector<72x512xbf16>
    %cst_65 = arith.constant dense<0.000000e+00> : vector<4x512xf32>
    %159 = tpu.matmul %107, %158, %cst_65 {dimension_numbers = #tpu.dot_dimension_numbers<[1], [0], [0], [1], [0, 0, 1, 1], [], []>} : vector<4x72xbf16>, vector<72x512xbf16>, vector<4x512xf32> -> vector<4x512xf32>
    %cst_66 = arith.constant 0.000000e+00 : f32
    %160 = vector.broadcast %cst_66 : f32 to vector<4x512xf32>
    %161 = arith.maximumf %159, %160 : vector<4x512xf32>
    %162 = arith.addf %161, %4 : vector<4x512xf32>
    %163 = vector.extract_strided_slice %162 {offsets = [0, 0], sizes = [4, 256], strides = [1, 1]} : vector<4x512xf32> to vector<4x256xf32>
    %c0_67 = arith.constant 0 : index
    %c0_68 = arith.constant 0 : index
    %c0_69 = arith.constant 0 : index
    %164 = vector.load %arg8[%c0_67, %c0_68, %c0_69] : memref<2x4x256xf32, #tpu.memory_space<vmem>>, vector<1x4x256xf32>
    %165 = vector.shape_cast %164 : vector<1x4x256xf32> to vector<4x256xf32>
    %166 = vector.shape_cast %163 : vector<4x256xf32> to vector<1x4x256xf32>
    tpu.vector_store %arg8[%c0_67, %c0_68, %c0_69], %166 {strides = array<i32>} : memref<2x4x256xf32, #tpu.memory_space<vmem>>, vector<1x4x256xf32>,
    %167 = vector.extract_strided_slice %162 {offsets = [0, 256], sizes = [4, 256], strides = [1, 1]} : vector<4x512xf32> to vector<4x256xf32>
    %c1_70 = arith.constant 1 : index
    %c0_71 = arith.constant 0 : index
    %c0_72 = arith.constant 0 : index
    %168 = vector.load %arg8[%c1_70, %c0_71, %c0_72] : memref<2x4x256xf32, #tpu.memory_space<vmem>>, vector<1x4x256xf32>
    %169 = vector.shape_cast %168 : vector<1x4x256xf32> to vector<4x256xf32>
    %170 = vector.shape_cast %167 : vector<4x256xf32> to vector<1x4x256xf32>
    tpu.vector_store %arg8[%c1_70, %c0_71, %c0_72], %170 {strides = array<i32>} : memref<2x4x256xf32, #tpu.memory_space<vmem>>, vector<1x4x256xf32>,
    return
  }
}

</mosaic_0001>

<bundles_post_ra>
// kernel: esn_res_block.1
= control target key start
LH: loop header
LB: loop body
LE: loop exit
PB: predicated region body
PF: predicated region fallthrough
CT: control target
= control target key end

     0   :  { %vm49_vm0 = vcmask 1043456   ;;  %v1435_v22 = vmov 0   ;;  %s1438_s13 = smov 1   ;;  %s1439_s14 = smov 15   ;;  %v108_v48 = vlaneseq  ;;  %vm600_vm9 = vcmask 1041408   ;;  %s2040_s0 = inlined_call_operand.vmem [shape: f32[2,4,256], index: 0, kind: input, shape index: {}]   ;;  %s2041_s6 = inlined_call_operand.vmem [shape: f32[4,1], index: 6, kind: input, shape index: {}]   ;;  %s2042_s7 = inlined_call_operand.vmem [shape: f32[4,1], index: 7, kind: input, shape index: {}]   ;;  %s2043_s3 = inlined_call_operand.vmem [shape: f32[9,512], index: 3, kind: input, shape index: {}]   ;;  %s2044_s1 = inlined_call_operand.vmem [shape: bf16[8,36], index: 1, kind: input, shape index: {}]   ;;  %s2045_s4 = inlined_call_operand.vmem [shape: f32[8,1], index: 4, kind: input, shape index: {}]   ;;  %s2046_s5 = inlined_call_operand.vmem [shape: f32[8,1], index: 5, kind: input, shape index: {}]   ;;  %s2047_s2 = inlined_call_operand.vmem [shape: bf16[4,72], index: 2, kind: input, shape index: {}]   ;;  %s2048_s8 = inlined_call_operand.vmem [shape: f32[2,4,256], index: 8, kind: output, shape index: {}]  }
   0x1   :  { %v30_v0 = vld [vmem:[%s2040_s0] sm:$0xff]  ;;  %v1262_v1 = vld [vmem:[%s2040_s0 + $0x8] sm:$0xff]  ;;  %1389 = vset.pattern.permute.xlu1 %v1435_v22  ;;  %645 = vmatprep.mubr.bf16.mxu0 %v1435_v22  ;;  %s1440_s15 = smov 127   ;;  %s1441_s16 = smov 112   ;;  %vm596_vm10 = vcmask 293888   ;;  %vm1141_vm11 = vcmask 588800  }
   0x2   :  { %v1495_v2 = vcombine.high %v30_v0, %v30_v0  ;;  %v1497_v3 = vcombine.high %v1262_v1, %v1262_v1  ;;  %v50_v4 = vsel %vm49_vm0, %v30_v0, 0.0  ;;  %v59_v5 = vmul.f32 %v30_v0, %v30_v0  ;;  %686 = vmatprep.mubr.bf16.mxu1 %v1435_v22  ;;  %1390 = vset.pattern.permute.xlu0 %v1435_v22  ;;  %v47_v30 = vld [vmem:[%s2041_s6] sm:$0xf]  ;;  %s1436_s6 = smov 16   ;;  %s1442_s17 = smov 113   ;;  %v1567_v52 = vld [vmem:[%s2043_s3 + $0x8] sm:$0xff] }
   0x3   :  { %v61_v6 = vmul.f32 %v1262_v1, %v1262_v1  ;;  %v53_v8 = vsel %vm49_vm0, %v1262_v1, 0.0  ;;  %v48_v33 = vld [vmem:[%s2042_s7] sm:$0xf]  ;;  %s1437_s7 = smov 17   ;;  %s1443_s18 = smov 111   ;;  %v1557_v49 = vshrl.u32 %v108_v48, 7 }
   0x4   :  { %v51_v7 = vsel %vm49_vm0, %v1495_v2, 0.0  ;;  %v60_v9 = vmul.f32 %v1495_v2, %v1495_v2  ;;  %v62_v10 = vmul.f32 %v1497_v3, %v1497_v3  ;;  %v63_v12 = vsel %vm49_vm0, %v59_v5, 0.0  ;;  %v1572_v53 = vld [vmem:[%s2043_s3] sm:$0xff] }
   0x5   :  { %v52_v11 = vadd.f32 %v51_v7, %v50_v4  ;;  %v55_v13 = vsel %vm49_vm0, %v1497_v3, 0.0  ;;  %v66_v15 = vsel %vm49_vm0, %v61_v6, 0.0  ;;  %v1559_v50 = vand.u32 127, %v108_v48  ;;  %v1601_v7 = vld [vmem:[%s2043_s3 + $0x10] sm:$0xff] }
   0x6   :  { %v64_v14 = vsel %vm49_vm0, %v60_v9, 0.0  ;;  %v68_v18 = vsel %vm49_vm0, %v62_v10, 0.0  ;;  %v1562_v51 = vsub.s32 1, %v1557_v49  ;;  %v272_v6 = vsub.s32 3, %v1557_v49 }
   0x7   :  { %v54_v16 = vadd.f32 %v53_v8, %v52_v11  ;;  %v65_v17 = vadd.f32 %v64_v14, %v63_v12  ;;  %vm161_vm1 = vcmp.lt.s32.totalorder %v1559_v50, 16  ;;  %v1606_v8 = vld [vmem:[%s2043_s3 + $0x18] sm:$0xff]  ;;  %vm265_vm2 = vcmp.lt.s32.totalorder %v1559_v50, 1 }
   0x8   :  { %v1579_v56 = vrot.slane %v1567_v52, %v1562_v51  ;;  %v1583_v57 = vrot.slane %v1572_v53, %v1562_v51  ;;  %v1610_v11 = vrot.slane %v1567_v52, %v272_v6  ;;  %v1613_v12 = vrot.slane %v1572_v53, %v272_v6 }
   0x9   :  { %v56_v19 = vadd.f32 %v55_v13, %v54_v16  ;;  %v67_v20 = vadd.f32 %v66_v15, %v65_v17  ;;  %v1616_v13 = vrot.slane %v1601_v7, %v272_v6  ;;  %v1619_v14 = vrot.slane %v1606_v8, %v272_v6 }
   0xa   :  { %vm110_vm3 = vcmp.lt.s32.totalorder %v1559_v50, 17  ;;  %vm214_vm4 = vcmp.lt.s32.totalorder %v1559_v50, 15  ;;  %v343_v6 = vsub.s32 5, %v1557_v49  ;;  %vm336_vm5 = vcmp.lt.s32.totalorder %v1559_v50, 127 }
   0xb   :  { %57 = vadd.xlane.f32.xlu0 %v56_v19  ;;  %v69_v21 = vadd.f32 %v68_v18, %v67_v20  ;;  %vm440_vm6 = vcmp.lt.s32.totalorder %v1559_v50, 112  ;;  %vm389_vm7 = vcmp.lt.s32.totalorder %v1559_v50, 113  ;;  %vm493_vm8 = vcmp.lt.s32.totalorder %v1559_v50, 111 }
   0xf   :  { %70 = vadd.xlane.f32.xlu0 %v69_v21  ;;  %v1630_v21 = vsub.s32 0, %v1557_v49 }
  0x98   :  { %v58_v23 = vpop.xlane.xlu0 %57 }
  0x99   :  { %v72_v24 = vmul.f32 0.001953125, %v58_v23 }
  0x9b   :  { %v74_v26 = vmul.f32 %v72_v24, %v72_v24 }
  0x9c   :  { %v71_v25 = vpop.xlane.xlu0 %70 }
  0x9d   :  { %v73_v27 = vmul.f32 0.001953125, %v71_v25 }
  0x9f   :  { %v75_v28 = vsub.f32 %v73_v27, %v74_v26 }
  0xa1   :  { %v76_v29 = vadd.f32 1e-05, %v75_v28 }
  0xa3   :  { %1409 = vrsqrt.f32 %v76_v29 }
  0xad   :  { %v1410_v31 = vpop.eup %1409 }
  0xae   :  { %v78_v32 = vmul.f32 %v1410_v31, %v47_v30  ;;  %v221_v31 = vsub.s32 2, %v1557_v49 }
  0xb0   :  { %83 = vperm.xlu1 %1389, %v78_v32   ;;  %v79_v34 = vmul.f32 %v78_v32, %v72_v24 }
  0xb2   :  { %v80_v35 = vsub.f32 %v48_v33, %v79_v34  ;;  %v1640_v34 = vrot.slane %v1567_v52, %v1630_v21 }
  0xb4   :  { %92 = vperm.xlu1 %1389, %v80_v35   ;;  %v1644_v35 = vrot.slane %v1572_v53, %v1630_v21 }
 0x12f   :  { %v84_v36 = vpop.permute.xlu1 %83 }
 0x130   :  { %v86_v37 = vmul.f32 %v84_v36, %v30_v0  ;;  %v87_v38 = vmul.f32 %v84_v36, %v1495_v2  ;;  %v88_v39 = vmul.f32 %v1262_v1, %v84_v36  ;;  %v89_v40 = vmul.f32 %v84_v36, %v1497_v3 }
 0x133   :  { %v93_v41 = vpop.permute.xlu1 %92 }
 0x134   :  { %v95_v42 = vadd.f32 %v93_v41, %v86_v37  ;;  %v96_v43 = vadd.f32 %v93_v41, %v87_v38  ;;  %v97_v44 = vadd.f32 %v93_v41, %v88_v39  ;;  %v98_v45 = vadd.f32 %v93_v41, %v89_v40 }
 0x135   :  { %v1658_v40 = vrot.slane %v1572_v53, %v221_v31 }
 0x136   :  { %155 = vrot.lane.b32.xlu1 %v96_v43, %s1436_s6  ;;  %153 = vrot.lane.b32.xlu0 %v95_v42, %s1436_s6  ;;  %v1352_v46 = vpack.c.bf16 %v96_v43, %v95_v42  ;;  %v1353_v47 = vpack.c.bf16 %v98_v45, %v97_v44 }
 0x138   :  { %326 = vst [vmem:[#allocation2 + $0x20] sm:$0x33] %v1352_v46  ;;  %327 = vst [vmem:[#allocation2 + $0x28] sm:$0x33] %v1353_v47 }
 0x13a   :  { %159 = vrot.lane.b32.xlu1 %v98_v45, %s1436_s6  ;;  %102 = vrot.lane.b32.xlu0 %v96_v43, %s1437_s7 }
 0x13e   :  { %257 = vrot.lane.b32.xlu1 %v95_v42, %s1438_s13  ;;  %206 = vrot.lane.b32.xlu0 %v95_v42, %s1439_s14 }
 0x142   :  { %259 = vrot.lane.b32.xlu1 %v96_v43, %s1438_s13  ;;  %212 = vrot.lane.b32.xlu0 %v98_v45, %s1439_s14 }
 0x146   :  { %263 = vrot.lane.b32.xlu1 %v98_v45, %s1438_s13  ;;  %261 = vrot.lane.b32.xlu0 %v97_v44, %s1438_s13 }
 0x14a   :  { %100 = vrot.lane.b32.xlu1 %v95_v42, %s1437_s7  ;;  %330 = vrot.lane.b32.xlu0 %v96_v43, %s1440_s15 }
 0x14e   :  { %106 = vrot.lane.b32.xlu1 %v98_v45, %s1437_s7  ;;  %432 = vrot.lane.b32.xlu0 %v95_v42, %s1441_s16 }
 0x152   :  { %208 = vrot.lane.b32.xlu1 %v96_v43, %s1439_s14  ;;  %436 = vrot.lane.b32.xlu0 %v97_v44, %s1441_s16 }
 0x156   :  { %157 = vrot.lane.b32.xlu1 %v97_v44, %s1436_s6  ;;  %210 = vrot.lane.b32.xlu0 %v97_v44, %s1439_s14 }
 0x15a   :  { %328 = vrot.lane.b32.xlu1 %v95_v42, %s1440_s15  ;;  %383 = vrot.lane.b32.xlu0 %v96_v43, %s1442_s17 }
 0x15e   :  { %332 = vrot.lane.b32.xlu1 %v97_v44, %s1440_s15  ;;  %334 = vrot.lane.b32.xlu0 %v98_v45, %s1440_s15 }
 0x162   :  { %434 = vrot.lane.b32.xlu1 %v96_v43, %s1441_s16  ;;  %387 = vrot.lane.b32.xlu0 %v98_v45, %s1442_s17 }
 0x166   :  { %104 = vrot.lane.b32.xlu1 %v97_v44, %s1437_s7  ;;  %487 = vrot.lane.b32.xlu0 %v96_v43, %s1443_s18  ;;  %v1663_v43 = vrot.slane %v1567_v52, %v221_v31 }
 0x16a   :  { %381 = vrot.lane.b32.xlu1 %v95_v42, %s1442_s17  ;;  %491 = vrot.lane.b32.xlu0 %v98_v45, %s1443_s18 }
 0x16e   :  { %385 = vrot.lane.b32.xlu1 %v97_v44, %s1442_s17 }
 0x172   :  { %438 = vrot.lane.b32.xlu1 %v98_v45, %s1441_s16 }
 0x176   :  { %485 = vrot.lane.b32.xlu1 %v95_v42, %s1443_s18 }
 0x17a   :  { %489 = vrot.lane.b32.xlu1 %v97_v44, %s1443_s18 }
 0x1a8   :  { %v1574_v54 = vpop.permute.xlu1 %155  ;;  %v154_v55 = vpop.permute.xlu0 %153 }
 0x1a9   :  { %v164_v58 = vsel %vm161_vm1, %v154_v55, %v1574_v54 }
 0x1aa   :  { %v183_v62 = vmul.f32 %v1579_v56, %v164_v58  ;;  %v1677_v58 = vrot.slane %v1606_v8, %v1562_v51 }
 0x1ac   :  { %v1588_v59 = vpop.permute.xlu1 %159  ;;  %v1590_v60 = vpop.permute.xlu0 %102 }
 0x1ad   :  { %v165_v61 = vsel %vm161_vm1, %v1588_v59, %v154_v55  ;;  %v1673_v55 = vrot.slane %v1601_v7, %v1562_v51 }
 0x1ae   :  { %v182_v63 = vmul.f32 %v1583_v57, %v165_v61 }
 0x1b0   :  { %v1346_v0 = vpack.c.bf16 %v183_v62, %v182_v63  ;;  %v258_v1 = vpop.permute.xlu1 %257  ;;  %v207_v4 = vpop.permute.xlu0 %206  ;;  %v1682_v63 = vrot.slane %v1601_v7, %v221_v31 }
 0x1b2   :  { %v200_v5 = vrot.slane %v1346_v0, 6  ;;  %v1685_v0 = vrot.slane %v1606_v8, %v221_v31 }
 0x1b4   :  { %204 = vst [vmem:[#allocation2] sm:$0xcc] %v200_v5  ;;  %v260_v9 = vpop.permute.xlu1 %259  ;;  %v213_v10 = vpop.permute.xlu0 %212 }
 0x1b5   :  { %v268_v15 = vsel %vm265_vm2, %v258_v1, %v260_v9  ;;  %v218_v44 = vsel %vm214_vm4, %v213_v10, %v207_v4 }
 0x1b6   :  { %v287_v23 = vmul.f32 %v1610_v11, %v268_v15  ;;  %v235_v61 = vmul.f32 %v1658_v40, %v218_v44 }
 0x1b8   :  { %v264_v16 = vpop.permute.xlu1 %263  ;;  %v262_v17 = vpop.permute.xlu0 %261 }
 0x1b9   :  { %v269_v18 = vsel %vm265_vm2, %v264_v16, %v258_v1  ;;  %v266_v19 = vsel %vm265_vm2, %v262_v17, %v264_v16  ;;  %v267_v20 = vsel %vm265_vm2, %v260_v9, %v262_v17 }
 0x1ba   :  { %v286_v24 = vmul.f32 %v1613_v12, %v269_v18  ;;  %v288_v25 = vmul.f32 %v1616_v13, %v267_v20  ;;  %v289_v26 = vmul.f32 %v1619_v14, %v266_v19 }
 0x1bc   :  { %v1350_v27 = vpack.c.bf16 %v287_v23, %v286_v24  ;;  %v1351_v28 = vpack.c.bf16 %v289_v26, %v288_v25  ;;  %v101_v29 = vpop.permute.xlu1 %100  ;;  %v331_v30 = vpop.permute.xlu0 %330  ;;  %v1705_v25 = vrot.slane %v1572_v53, %v343_v6 }
 0x1bd   :  { %v113_v36 = vsel %vm110_vm3, %v101_v29, %v1590_v60 }
 0x1be   :  { %v304_v32 = vrot.slane %v1350_v27, 6  ;;  %v305_v33 = vrot.slane %v1351_v28, 6  ;;  %v132_v41 = vmul.f32 %v1640_v34, %v113_v36  ;;  %v1708_v27 = vrot.slane %v1567_v52, %v343_v6 }
 0x1bf   :  { %v1711_v28 = vrot.slane %v1601_v7, %v343_v6 }
 0x1c0   :  { %308 = vst [vmem:[#allocation2 + $0x10] sm:$0xcc] %v304_v32  ;;  %309 = vst [vmem:[#allocation2 + $0x18] sm:$0xcc] %v305_v33  ;;  %v1650_v37 = vpop.permute.xlu1 %106  ;;  %v1652_v38 = vpop.permute.xlu0 %432 }
 0x1c1   :  { %v114_v39 = vsel %vm110_vm3, %v1650_v37, %v101_v29  ;;  %v1714_v29 = vrot.slane %v1606_v8, %v343_v6 }
 0x1c2   :  { %v131_v42 = vmul.f32 %v1644_v35, %v114_v39 }
 0x1c4   :  { %v1344_v45 = vpack.c.bf16 %v132_v41, %v131_v42  ;;  %v209_v46 = vpop.permute.xlu1 %208  ;;  %v1667_v47 = vpop.permute.xlu0 %436 }
 0x1c5   :  { %v217_v48 = vsel %vm214_vm4, %v207_v4, %v209_v46 }
 0x1c6   :  { %151 = vst [vmem:[#allocation2] sm:$0x33] %v1344_v45  ;;  %v236_v62 = vmul.f32 %v1663_v43, %v217_v48 }
 0x1c8   :  { %v1348_v1 = vpack.c.bf16 %v236_v62, %v235_v61  ;;  %v158_v4 = vpop.permute.xlu1 %157  ;;  %v211_v5 = vpop.permute.xlu0 %210 }
 0x1c9   :  { %v162_v51 = vsel %vm161_vm1, %v158_v4, %v1588_v59  ;;  %v163_v9 = vsel %vm161_vm1, %v1574_v54, %v158_v4  ;;  %v215_v15 = vsel %vm214_vm4, %v211_v5, %v213_v10  ;;  %v216_v16 = vsel %vm214_vm4, %v209_v46, %v211_v5 }
 0x1ca   :  { %255 = vst [vmem:[#allocation2 + $0x10] sm:$0x33] %v1348_v1  ;;  %v184_v17 = vmul.f32 %v1673_v55, %v163_v9  ;;  %v185_v18 = vmul.f32 %v1677_v58, %v162_v51  ;;  %v237_v19 = vmul.f32 %v1682_v63, %v216_v16  ;;  %v238_v20 = vmul.f32 %v1685_v0, %v215_v15 }
 0x1cb   :  { %v447_v10 = vsub.s32 7, %v1557_v49  ;;  %v1743_v9 = vrot.slane %v1601_v7, %v1630_v21  ;;  %v1747_v15 = vrot.slane %v1606_v8, %v1630_v21 }
 0x1cc   :  { %v1347_v59 = vpack.c.bf16 %v185_v18, %v184_v17  ;;  %v1349_v23 = vpack.c.bf16 %v238_v20, %v237_v19  ;;  %v329_v54 = vpop.permute.xlu1 %328  ;;  %v384_v24 = vpop.permute.xlu0 %383 }
 0x1cd   :  { %v339_v31 = vsel %vm336_vm5, %v329_v54, %v331_v30  ;;  %v1720_v36 = vrot.slane %v1572_v53, %v447_v10  ;;  %v1729_v44 = vrot.slane %v1567_v52, %v447_v10 }
 0x1ce   :  { %v201_v26 = vrot.slane %v1347_v59, 6  ;;  %256 = vst [vmem:[#allocation2 + $0x18] sm:$0x33] %v1349_v23  ;;  %v357_v48 = vmul.f32 %v1705_v25, %v339_v31 }
 0x1d0   :  { %205 = vst [vmem:[#allocation2 + $0x8] sm:$0xcc] %v201_v26  ;;  %v333_v32 = vpop.permute.xlu1 %332  ;;  %v335_v33 = vpop.permute.xlu0 %334 }
 0x1d1   :  { %v338_v39 = vsel %vm336_vm5, %v331_v30, %v333_v32  ;;  %v337_v41 = vsel %vm336_vm5, %v333_v32, %v335_v33  ;;  %v340_v42 = vsel %vm336_vm5, %v335_v33, %v329_v54  ;;  %v1393_v45 = vld [vmem:[#allocation2 + $0x4] ss:$16 sps:$4 sm:$0xff]   ;;  %v1395_v46 = vld [vmem:[#allocation2] ss:$16 sps:$4 sm:$0xff]   ;;  %v396_v32 = vsub.s32 6, %v1557_v49 }
 0x1d2   :  { %v358_v61 = vmul.f32 %v1708_v27, %v338_v39  ;;  %v359_v62 = vmul.f32 %v1711_v28, %v337_v41  ;;  %v360_v1 = vmul.f32 %v1714_v29, %v340_v42  ;;  %613 = vmatprep.subr.bf16.mxu0 %v1393_v45 }
 0x1d3   :  { %614 = vmatpush1.bf16.msra.mxu0 %v1395_v46  ;;  %v1765_v42 = vrot.slane %v1606_v8, %v396_v32  ;;  %v1771_v45 = vrot.slane %v1601_v7, %v396_v32 }
 0x1d4   :  { %v1354_v30 = vpack.c.bf16 %v358_v61, %v357_v48  ;;  %v1355_v4 = vpack.c.bf16 %v360_v1, %v359_v62  ;;  %v435_v5 = vpop.permute.xlu1 %434  ;;  %v388_v41 = vpop.permute.xlu0 %387  ;;  %v1782_v62 = vrot.slane %v1601_v7, %v447_v10 }
 0x1d5   :  { %v442_v6 = vsel %vm440_vm6, %v435_v5, %v1667_v47  ;;  %v443_v51 = vsel %vm440_vm6, %v1652_v38, %v435_v5 }
 0x1d6   :  { %v375_v16 = vrot.slane %v1354_v30, 6  ;;  %v376_v17 = vrot.slane %v1355_v4, 6  ;;  %v461_v18 = vmul.f32 %v1720_v36, %v443_v51  ;;  %v462_v19 = vmul.f32 %v1729_v44, %v442_v6 }
 0x1d8   :  { %379 = vst [vmem:[#allocation2 + $0x20] sm:$0xcc] %v375_v16  ;;  %380 = vst [vmem:[#allocation2 + $0x28] sm:$0xcc] %v376_v17  ;;  %v1358_v20 = vpack.c.bf16 %v462_v19, %v461_v18  ;;  %v105_v59 = vpop.permute.xlu1 %104  ;;  %v488_v6 = vpop.permute.xlu0 %487 }
 0x1d9   :  { %v111_v23 = vsel %vm110_vm3, %v105_v59, %v1650_v37  ;;  %v112_v54 = vsel %vm110_vm3, %v1590_v60, %v105_v59  ;;  %v1762_v37 = vrot.slane %v1572_v53, %v396_v32  ;;  %v1768_v60 = vrot.slane %v1567_v52, %v396_v32  ;;  %v1822_v32 = vld [vmem:[%s2043_s3 + $0x30] ss:$0 sm:$0xff] }
 0x1da   :  { %v479_v21 = vrot.slane %v1358_v20, 6  ;;  %v133_v26 = vmul.f32 %v1743_v9, %v112_v54  ;;  %v134_v31 = vmul.f32 %v1747_v15, %v111_v23  ;;  %v1785_v52 = vrot.slane %v1606_v8, %v447_v10  ;;  %v1808_v54 = vld [vmem:[%s2043_s3 + $0x38] ss:$0 sm:$0xff] }
 0x1dc   :  { %483 = vst [vmem:[#allocation2 + $0x30] sm:$0xcc] %v479_v21  ;;  %v1345_v33 = vpack.c.bf16 %v134_v31, %v133_v26  ;;  %v382_v39 = vpop.permute.xlu1 %381  ;;  %v492_v23 = vpop.permute.xlu0 %491  ;;  %v1817_v31 = vld [vmem:[%s2043_s3 + $0x28] ss:$0 sm:$0xff] }
 0x1dd   :  { %v392_v49 = vsel %vm389_vm7, %v382_v39, %v384_v24  ;;  %v393_v46 = vsel %vm389_vm7, %v388_v41, %v382_v39 }
 0x1de   :  { %152 = vst [vmem:[#allocation2 + $0x8] sm:$0x33] %v1345_v33  ;;  %v410_v1 = vmul.f32 %v1762_v37, %v392_v49  ;;  %v413_v30 = vmul.f32 %v1765_v42, %v393_v46 }
 0x1e0   :  { %v386_v48 = vpop.permute.xlu1 %385 }
 0x1e1   :  { %v390_v53 = vsel %vm389_vm7, %v386_v48, %v388_v41  ;;  %v391_v61 = vsel %vm389_vm7, %v384_v24, %v386_v48 }
 0x1e2   :  { %v411_v4 = vmul.f32 %v1768_v60, %v391_v61  ;;  %v412_v5 = vmul.f32 %v1771_v45, %v390_v53 }
 0x1e4   :  { %v1356_v51 = vpack.c.bf16 %v411_v4, %v410_v1  ;;  %v1357_v16 = vpack.c.bf16 %v413_v30, %v412_v5  ;;  %v439_v17 = vpop.permute.xlu1 %438 }
 0x1e5   :  { %v441_v7 = vsel %vm440_vm6, %v1667_v47, %v439_v17  ;;  %v444_v8 = vsel %vm440_vm6, %v439_v17, %v1652_v38  ;;  %v1396_v24 = vld [vmem:[#allocation2 + $0xc] ss:$16 sps:$4 sm:$0xff]   ;;  %v1398_v10 = vld [vmem:[#allocation2 + $0x8] ss:$16 sps:$4 sm:$0xff]   ;;  %v1803_v38 = vld [vmem:[%s2043_s3 + $0x20] ss:$0 sm:$0xff] }
 0x1e6   :  { %430 = vst [vmem:[#allocation2 + $0x30] sm:$0x33] %v1356_v51  ;;  %431 = vst [vmem:[#allocation2 + $0x38] sm:$0x33] %v1357_v16  ;;  %v463_v18 = vmul.f32 %v1782_v62, %v441_v7  ;;  %v464_v19 = vmul.f32 %v1785_v52, %v444_v8  ;;  %654 = vmatprep.subr.bf16.mxu1 %v1396_v24 }
 0x1e7   :  { %655 = vmatpush1.bf16.msra.mxu1 %v1398_v10 }
 0x1e8   :  { %v1359_v20 = vpack.c.bf16 %v464_v19, %v463_v18  ;;  %v486_v59 = vpop.permute.xlu1 %485  ;;  %v99_v19 = vld [vmem:[%s2044_s1] sm:$0xf] }
 0x1e9   :  { %v496_v21 = vsel %vm493_vm8, %v486_v59, %v488_v6  ;;  %v497_v26 = vsel %vm493_vm8, %v492_v23, %v486_v59 }
 0x1ea   :  { %v480_v47 = vrot.slane %v1359_v20, 6  ;;  %v514_v48 = vmul.f32 %v1803_v38, %v496_v21  ;;  %v517_v53 = vmul.f32 %v1808_v54, %v497_v26 }
 0x1ec   :  { %484 = vst [vmem:[#allocation2 + $0x38] sm:$0xcc] %v480_v47  ;;  %v490_v33 = vpop.permute.xlu1 %489 }
 0x1ed   :  { %v494_v39 = vsel %vm493_vm8, %v490_v33, %v492_v23  ;;  %v495_v41 = vsel %vm493_vm8, %v488_v6, %v490_v33  ;;  %v1399_v49 = vld [vmem:[#allocation2 + $0x24] ss:$16 sps:$4 sm:$0xff]   ;;  %v1401_v46 = vld [vmem:[#allocation2 + $0x20] ss:$16 sps:$4 sm:$0xff]  }
 0x1ee   :  { %v515_v61 = vmul.f32 %v1817_v31, %v495_v41  ;;  %v516_v1 = vmul.f32 %v1822_v32, %v494_v39  ;;  %615 = vmatprep.subr.bf16.mxu0 %v1399_v49 }
 0x1ef   :  { %616 = vmatpush1.bf16.msra.mxu0 %v1401_v46 }
 0x1f0   :  { %v1360_v30 = vpack.c.bf16 %v515_v61, %v514_v48  ;;  %v1361_v4 = vpack.c.bf16 %v517_v53, %v516_v1 }
 0x1f2   :  { %534 = vst [vmem:[#allocation2 + $0x40] sm:$0x33] %v1360_v30  ;;  %535 = vst [vmem:[#allocation2 + $0x48] sm:$0x33] %v1361_v4 }
 0x1f3   :  { %v1402_v5 = vld [vmem:[#allocation2 + $0x2c] ss:$16 sps:$4 sm:$0xff]   ;;  %v1404_v51 = vld [vmem:[#allocation2 + $0x28] ss:$16 sps:$4 sm:$0xff]  }
 0x1f4   :  { %656 = vmatprep.subr.bf16.mxu1 %v1402_v5 }
 0x1f5   :  { %657 = vmatpush1.bf16.msra.mxu1 %v1404_v51 }
 0x1f9   :  { %v544_v6 = vld [vmem:[#allocation2 + $0x40] sm:$0x33]  ;;  %v545_v16 = vld [vmem:[#allocation2 + $0x48] sm:$0x33] }
 0x1fa   :  { %v1294_v17 = vcombine.high %v544_v6, %v544_v6  ;;  %v1296_v7 = vcombine.high %v545_v16, %v545_v16  ;;  %v1293_v8 = vcombine.low %v544_v6, %v544_v6  ;;  %v1295_v24 = vcombine.low %v545_v16, %v545_v16 }
 0x1fc   :  { %1297 = vmatprep.subr.msk.bf16.mxu0 %vm600_vm9, %v1294_v17  ;;  %1299 = vmatprep.subr.msk.bf16.mxu1 %vm600_vm9, %v1296_v7  ;;  %v602_v10 = vsel %vm600_vm9, %v1293_v8, 0  ;;  %v608_v18 = vsel %vm600_vm9, %v1295_v24, 0 }
 0x1fd   :  { %618 = vmatpush1.bf16.msra.mxu0 %v602_v10  ;;  %659 = vmatpush1.bf16.msra.mxu1 %v608_v18 }
 0x200   :  { %1298 = vmatmul.mubr.msk.bf16.vlgmr.msra.gmra.mrb[0].mxu0 %vm596_vm10, %v99_v19  ;;  %1300 = vmatmul.mubr.msk.bf16.vlgmr.msra.gmra.mrb[0].mxu1 %vm596_vm10, %v99_v19 }
 0x201   :  { %1189 = vmatprep.mubr.bf16.mxu0 %v1435_v22  ;;  %1230 = vmatprep.mubr.bf16.mxu1 %v1435_v22 }
 0x2d3   :  { %v647_v20 = vpop.f32.mrb[0].mxu0  ;;  %v688_v59 = vpop.f32.mrb[0].mxu1 }
 0x2d4   :  { %v695_v23 = vmax.f32 %v647_v20, 0.0  ;;  %v697_v47 = vmax.f32 %v688_v59, 0.0  ;;  %v649_v21 = vpop.f32.mrb[1].mxu0  ;;  %v690_v26 = vpop.f32.mrb[1].mxu1  ;;  %v699_v20 = vld [vmem:[%s2045_s4] sm:$0xff] }
 0x2d5   :  { %v696_v33 = vmax.f32 %v649_v21, 0.0  ;;  %v651_v39 = vpop.f32.mrb[2].mxu0  ;;  %v692_v41 = vpop.f32.mrb[2].mxu1  ;;  %v698_v30 = vmax.f32 %v690_v26, 0.0  ;;  %v700_v26 = vld [vmem:[%s2046_s5] sm:$0xff] }
 0x2d6   :  { %v706_v49 = vmul.f32 %v695_v23, %v695_v23  ;;  %v652_v46 = vpop.f32.mrb[3].mxu0  ;;  %v693_v48 = vpop.f32.mrb[3].mxu1  ;;  %v708_v53 = vmul.f32 %v697_v47, %v697_v47 }
 0x2d7   :  { %v701_v61 = vadd.f32 %v696_v33, %v695_v23  ;;  %v707_v1 = vmul.f32 %v696_v33, %v696_v33  ;;  %v709_v22 = vmul.f32 %v698_v30, %v698_v30 }
 0x2d9   :  { %v702_v4 = vadd.f32 %v701_v61, %v697_v47  ;;  %v710_v5 = vadd.f32 %v707_v1, %v706_v49 }
 0x2db   :  { %v703_v51 = vadd.f32 %v702_v4, %v698_v30  ;;  %v711_v6 = vadd.f32 %v710_v5, %v708_v53 }
 0x2dd   :  { %704 = vadd.xlane.f32.xlu1 %v703_v51  ;;  %v712_v16 = vadd.f32 %v711_v6, %v709_v22 }
 0x2df   :  { %713 = vadd.xlane.f32.xlu0 %v712_v16 }
 0x36a   :  { %v705_v17 = vpop.xlane.xlu1 %704 }
 0x36b   :  { %v715_v7 = vmul.f32 0.001953125, %v705_v17 }
 0x36c   :  { %v714_v8 = vpop.xlane.xlu0 %713 }
 0x36d   :  { %v717_v24 = vmul.f32 %v715_v7, %v715_v7  ;;  %v716_v10 = vmul.f32 0.001953125, %v714_v8 }
 0x36f   :  { %v718_v18 = vsub.f32 %v716_v10, %v717_v24 }
 0x371   :  { %v719_v19 = vadd.f32 1e-05, %v718_v18 }
 0x373   :  { %1411 = vrsqrt.f32 %v719_v19 }
 0x37d   :  { %v1412_v59 = vpop.eup %1411 }
 0x37e   :  { %v721_v21 = vmul.f32 %v1412_v59, %v699_v20 }
 0x380   :  { %726 = vperm.xlu0 %1390, %v721_v21   ;;  %v722_v39 = vmul.f32 %v721_v21, %v715_v7 }
 0x382   :  { %v723_v41 = vsub.f32 %v700_v26, %v722_v39 }
 0x384   :  { %735 = vperm.xlu1 %1389, %v723_v41  }
 0x3ff   :  { %v727_v49 = vpop.permute.xlu0 %726 }
 0x400   :  { %v729_v46 = vmul.f32 %v727_v49, %v695_v23  ;;  %v730_v48 = vmul.f32 %v727_v49, %v696_v33  ;;  %v731_v53 = vmul.f32 %v727_v49, %v697_v47  ;;  %v732_v61 = vmul.f32 %v727_v49, %v698_v30 }
 0x403   :  { %v736_v1 = vpop.permute.xlu1 %735 }
 0x404   :  { %v1843_v4 = vadd.f32 %v736_v1, %v729_v46  ;;  %v1845_v5 = vadd.f32 %v736_v1, %v730_v48  ;;  %v1847_v51 = vadd.f32 %v736_v1, %v731_v53  ;;  %v1849_v22 = vadd.f32 %v736_v1, %v732_v61 }
 0x406   :  { %781 = vrot.lane.b32.xlu0 %v1847_v51, %s1436_s6  ;;  %743 = vrot.lane.b32.xlu1 %v1843_v4, %s1437_s7  ;;  %v1370_v23 = vpack.c.bf16 %v1845_v5, %v1843_v4  ;;  %v1371_v47 = vpack.c.bf16 %v1849_v22, %v1847_v51 }
 0x408   :  { %895 = vst [vmem:[#allocation2 + $0x40] sm:$0xff] %v1370_v23  ;;  %896 = vst [vmem:[#allocation2 + $0x48] sm:$0xff] %v1371_v47 }
 0x40a   :  { %811 = vrot.lane.b32.xlu0 %v1843_v4, %s1439_s14  ;;  %745 = vrot.lane.b32.xlu1 %v1845_v5, %s1437_s7 }
 0x40e   :  { %815 = vrot.lane.b32.xlu0 %v1847_v51, %s1439_s14  ;;  %747 = vrot.lane.b32.xlu1 %v1847_v51, %s1437_s7 }
 0x412   :  { %845 = vrot.lane.b32.xlu0 %v1843_v4, %s1438_s13  ;;  %749 = vrot.lane.b32.xlu1 %v1849_v22, %s1437_s7 }
 0x416   :  { %849 = vrot.lane.b32.xlu0 %v1847_v51, %s1438_s13  ;;  %777 = vrot.lane.b32.xlu1 %v1843_v4, %s1436_s6 }
 0x41a   :  { %897 = vrot.lane.b32.xlu0 %v1843_v4, %s1440_s15  ;;  %779 = vrot.lane.b32.xlu1 %v1845_v5, %s1436_s6 }
 0x41e   :  { %901 = vrot.lane.b32.xlu0 %v1847_v51, %s1440_s15  ;;  %783 = vrot.lane.b32.xlu1 %v1849_v22, %s1436_s6 }
 0x422   :  { %931 = vrot.lane.b32.xlu0 %v1843_v4, %s1442_s17  ;;  %813 = vrot.lane.b32.xlu1 %v1845_v5, %s1439_s14 }
 0x426   :  { %935 = vrot.lane.b32.xlu0 %v1847_v51, %s1442_s17  ;;  %817 = vrot.lane.b32.xlu1 %v1849_v22, %s1439_s14 }
 0x42a   :  { %965 = vrot.lane.b32.xlu0 %v1843_v4, %s1441_s16  ;;  %847 = vrot.lane.b32.xlu1 %v1845_v5, %s1438_s13 }
 0x42e   :  { %969 = vrot.lane.b32.xlu0 %v1847_v51, %s1441_s16  ;;  %851 = vrot.lane.b32.xlu1 %v1849_v22, %s1438_s13 }
 0x432   :  { %999 = vrot.lane.b32.xlu0 %v1843_v4, %s1443_s18  ;;  %899 = vrot.lane.b32.xlu1 %v1845_v5, %s1440_s15 }
 0x436   :  { %1003 = vrot.lane.b32.xlu0 %v1847_v51, %s1443_s18  ;;  %903 = vrot.lane.b32.xlu1 %v1849_v22, %s1440_s15 }
 0x43a   :  { %933 = vrot.lane.b32.xlu1 %v1845_v5, %s1442_s17 }
 0x43e   :  { %937 = vrot.lane.b32.xlu1 %v1849_v22, %s1442_s17 }
 0x442   :  { %967 = vrot.lane.b32.xlu1 %v1845_v5, %s1441_s16 }
 0x446   :  { %971 = vrot.lane.b32.xlu1 %v1849_v22, %s1441_s16 }
 0x44a   :  { %1001 = vrot.lane.b32.xlu1 %v1845_v5, %s1443_s18 }
 0x44e   :  { %1005 = vrot.lane.b32.xlu1 %v1849_v22, %s1443_s18 }
 0x478   :  { %v782_v33 = vpop.permute.xlu0 %781  ;;  %v744_v30 = vpop.permute.xlu1 %743 }
 0x47c   :  { %v812_v6 = vpop.permute.xlu0 %811  ;;  %v746_v16 = vpop.permute.xlu1 %745 }
 0x47d   :  { %v753_v8 = vsel %vm110_vm3, %v744_v30, %v746_v16 }
 0x47e   :  { %v756_v20 = vmul.f32 %v753_v8, %v1640_v34 }
 0x480   :  { %v816_v17 = vpop.permute.xlu0 %815  ;;  %v748_v7 = vpop.permute.xlu1 %747 }
 0x481   :  { %v752_v24 = vsel %vm110_vm3, %v746_v16, %v748_v7 }
 0x482   :  { %v757_v59 = vmul.f32 %v752_v24, %v1743_v9 }
 0x484   :  { %v750_v10 = vpop.permute.xlu1 %749  ;;  %v846_v21 = vpop.permute.xlu0 %845 }
 0x485   :  { %v751_v18 = vsel %vm110_vm3, %v748_v7, %v750_v10  ;;  %v754_v19 = vsel %vm110_vm3, %v750_v10, %v744_v30 }
 0x486   :  { %v755_v26 = vmul.f32 %v754_v19, %v1644_v35  ;;  %v758_v39 = vmul.f32 %v751_v18, %v1747_v15 }
 0x488   :  { %v1362_v41 = vpack.c.bf16 %v756_v20, %v755_v26  ;;  %v1363_v49 = vpack.c.bf16 %v758_v39, %v757_v59  ;;  %v778_v46 = vpop.permute.xlu1 %777  ;;  %v850_v48 = vpop.permute.xlu0 %849 }
 0x48a   :  { %775 = vst [vmem:[#allocation2] sm:$0xff] %v1362_v41  ;;  %776 = vst [vmem:[#allocation2 + $0x8] sm:$0xff] %v1363_v49 }
 0x48c   :  { %v780_v53 = vpop.permute.xlu1 %779  ;;  %v898_v15 = vpop.permute.xlu0 %897 }
 0x48d   :  { %v786_v61 = vsel %vm161_vm1, %v780_v53, %v782_v33  ;;  %v787_v34 = vsel %vm161_vm1, %v778_v46, %v780_v53 }
 0x48e   :  { %v790_v23 = vmul.f32 %v787_v34, %v1579_v56  ;;  %v791_v47 = vmul.f32 %v786_v61, %v1673_v55 }
 0x490   :  { %v784_v1 = vpop.permute.xlu1 %783  ;;  %v1416_v18 = vpack.c.bf16 %v790_v23, %v756_v20  ;;  %v1417_v56 = vpack.c.bf16 %v791_v47, %v757_v59  ;;  %v902_v55 = vpop.permute.xlu0 %901 }
 0x491   :  { %v785_v9 = vsel %vm161_vm1, %v782_v33, %v784_v1  ;;  %v788_v35 = vsel %vm161_vm1, %v784_v1, %v778_v46 }
 0x492   :  { %v789_v30 = vmul.f32 %v788_v35, %v1583_v57  ;;  %v792_v16 = vmul.f32 %v785_v9, %v1677_v58  ;;  %1157 = vmatprep.subr.bf16.mxu0 %v1416_v18 }
 0x494   :  { %v1364_v7 = vpack.c.bf16 %v790_v23, %v789_v30  ;;  %v1365_v8 = vpack.c.bf16 %v792_v16, %v791_v47  ;;  %v814_v24 = vpop.permute.xlu1 %813  ;;  %v1415_v10 = vpack.c.bf16 %v789_v30, %v755_v26  ;;  %v1418_v41 = vpack.c.bf16 %v792_v16, %v758_v39  ;;  %v932_v34 = vpop.permute.xlu0 %931 }
 0x495   :  { %v820_v33 = vsel %vm214_vm4, %v814_v24, %v816_v17  ;;  %v821_v19 = vsel %vm214_vm4, %v812_v6, %v814_v24 }
 0x496   :  { %809 = vst [vmem:[#allocation2 + $0x10] sm:$0xff] %v1364_v7  ;;  %810 = vst [vmem:[#allocation2 + $0x18] sm:$0xff] %v1365_v8  ;;  %1198 = vmatprep.subr.bf16.mxu1 %v1418_v41  ;;  %1158 = vmatpush1.bf16.msra.mxu0 %v1415_v10  ;;  %v824_v20 = vmul.f32 %v821_v19, %v1663_v43  ;;  %v825_v26 = vmul.f32 %v820_v33, %v1682_v63 }
 0x497   :  { %1199 = vmatpush1.bf16.msra.mxu1 %v1417_v56 }
 0x498   :  { %v818_v49 = vpop.permute.xlu1 %817  ;;  %v936_v23 = vpop.permute.xlu0 %935 }
 0x499   :  { %v819_v57 = vsel %vm214_vm4, %v816_v17, %v818_v49  ;;  %v822_v58 = vsel %vm214_vm4, %v818_v49, %v812_v6 }
 0x49a   :  { %v823_v46 = vmul.f32 %v822_v58, %v1658_v40  ;;  %v826_v59 = vmul.f32 %v819_v57, %v1685_v0 }
 0x49c   :  { %v1366_v39 = vpack.c.bf16 %v824_v20, %v823_v46  ;;  %v1367_v53 = vpack.c.bf16 %v826_v59, %v825_v26  ;;  %v848_v61 = vpop.permute.xlu1 %847  ;;  %v966_v33 = vpop.permute.xlu0 %965 }
 0x49d   :  { %v854_v6 = vsel %vm265_vm2, %v848_v61, %v850_v48  ;;  %v855_v17 = vsel %vm265_vm2, %v846_v21, %v848_v61 }
 0x49e   :  { %843 = vst [vmem:[#allocation2 + $0x20] sm:$0xff] %v1366_v39  ;;  %844 = vst [vmem:[#allocation2 + $0x28] sm:$0xff] %v1367_v53  ;;  %v858_v0 = vmul.f32 %v855_v17, %v1610_v11  ;;  %v859_v1 = vmul.f32 %v854_v6, %v1616_v13 }
 0x4a0   :  { %v852_v43 = vpop.permute.xlu1 %851  ;;  %v1421_v8 = vpack.c.bf16 %v859_v1, %v825_v26 }
 0x4a1   :  { %v853_v63 = vsel %vm265_vm2, %v850_v48, %v852_v43  ;;  %v856_v40 = vsel %vm265_vm2, %v852_v43, %v846_v21 }
 0x4a2   :  { %v857_v9 = vmul.f32 %v856_v40, %v1613_v12  ;;  %v860_v35 = vmul.f32 %v853_v63, %v1619_v14  ;;  %v1420_v12 = vpack.c.bf16 %v858_v0, %v824_v20 }
 0x4a4   :  { %v1368_v47 = vpack.c.bf16 %v858_v0, %v857_v9  ;;  %v1369_v30 = vpack.c.bf16 %v860_v35, %v859_v1  ;;  %v900_v16 = vpop.permute.xlu1 %899  ;;  %v1419_v21 = vpack.c.bf16 %v857_v9, %v823_v46  ;;  %v1422_v14 = vpack.c.bf16 %v860_v35, %v826_v59  ;;  %1159 = vmatprep.subr.bf16.mxu0 %v1420_v12  ;;  %v1413_v12 = vld [vmem:[%s2040_s0] sm:$0xff] }
 0x4a5   :  { %v906_v7 = vsel %vm336_vm5, %v900_v16, %v902_v55  ;;  %v907_v48 = vsel %vm336_vm5, %v898_v15, %v900_v16 }
 0x4a6   :  { %877 = vst [vmem:[#allocation2 + $0x30] sm:$0xff] %v1368_v47  ;;  %878 = vst [vmem:[#allocation2 + $0x38] sm:$0xff] %v1369_v30  ;;  %v909_v11 = vmul.f32 %v907_v48, %v1705_v25  ;;  %v910_v13 = vmul.f32 %v906_v7, %v1708_v27  ;;  %1200 = vmatprep.subr.bf16.mxu1 %v1422_v14  ;;  %1160 = vmatpush1.bf16.msra.mxu0 %v1419_v21 }
 0x4a7   :  { %1201 = vmatpush1.bf16.msra.mxu1 %v1421_v8 }
 0x4a8   :  { %v904_v24 = vpop.permute.xlu1 %903  ;;  %v1423_v27 = vpack.c.bf16 %v909_v11, %v1843_v4  ;;  %v1424_v56 = vpack.c.bf16 %v910_v13, %v1845_v5  ;;  %v970_v4 = vpop.permute.xlu0 %969 }
 0x4a9   :  { %v905_v10 = vsel %vm336_vm5, %v902_v55, %v904_v24  ;;  %v908_v18 = vsel %vm336_vm5, %v904_v24, %v898_v15 }
 0x4aa   :  { %v911_v19 = vmul.f32 %v905_v10, %v1711_v28  ;;  %v912_v25 = vmul.f32 %v908_v18, %v1714_v29  ;;  %1161 = vmatprep.subr.bf16.mxu0 %v1424_v56  ;;  %v1414_v56 = vld [vmem:[%s2040_s0 + $0x8] sm:$0xff] }
 0x4ab   :  { %1162 = vmatpush1.bf16.msra.mxu0 %v1423_v27 }
 0x4ac   :  { %v934_v41 = vpop.permute.xlu1 %933  ;;  %v1425_v29 = vpack.c.bf16 %v911_v19, %v1847_v51  ;;  %v1426_v57 = vpack.c.bf16 %v912_v25, %v1849_v22  ;;  %v1000_v22 = vpop.permute.xlu0 %999 }
 0x4ad   :  { %v940_v55 = vsel %vm389_vm7, %v934_v41, %v936_v23  ;;  %v941_v15 = vsel %vm389_vm7, %v932_v34, %v934_v41 }
 0x4ae   :  { %v943_v49 = vmul.f32 %v941_v15, %v1762_v37  ;;  %v944_v28 = vmul.f32 %v940_v55, %v1768_v60  ;;  %1202 = vmatprep.subr.bf16.mxu1 %v1426_v57 }
 0x4af   :  { %1203 = vmatpush1.bf16.msra.mxu1 %v1425_v29 }
 0x4b0   :  { %v938_v58 = vpop.permute.xlu1 %937  ;;  %v1004_v43 = vpop.permute.xlu0 %1003 }
 0x4b1   :  { %v939_v5 = vsel %vm389_vm7, %v936_v23, %v938_v58  ;;  %v942_v20 = vsel %vm389_vm7, %v938_v58, %v932_v34 }
 0x4b2   :  { %v945_v26 = vmul.f32 %v939_v5, %v1771_v45  ;;  %v946_v37 = vmul.f32 %v942_v20, %v1765_v42 }
 0x4b4   :  { %v968_v46 = vpop.permute.xlu1 %967 }
 0x4b5   :  { %v974_v60 = vsel %vm440_vm6, %v968_v46, %v970_v4  ;;  %v975_v51 = vsel %vm440_vm6, %v966_v33, %v968_v46 }
 0x4b6   :  { %v977_v59 = vmul.f32 %v975_v51, %v1720_v36  ;;  %v978_v39 = vmul.f32 %v974_v60, %v1729_v44 }
 0x4b8   :  { %v972_v53 = vpop.permute.xlu1 %971  ;;  %v1427_v6 = vpack.c.bf16 %v977_v59, %v943_v49  ;;  %v1428_v17 = vpack.c.bf16 %v978_v39, %v944_v28 }
 0x4b9   :  { %v973_v61 = vsel %vm440_vm6, %v970_v4, %v972_v53  ;;  %v976_v45 = vsel %vm440_vm6, %v972_v53, %v966_v33 }
 0x4ba   :  { %v979_v42 = vmul.f32 %v973_v61, %v1782_v62  ;;  %v980_v34 = vmul.f32 %v976_v45, %v1785_v52  ;;  %1163 = vmatprep.subr.bf16.mxu0 %v1428_v17 }
 0x4bb   :  { %1164 = vmatpush1.bf16.msra.mxu0 %v1427_v6 }
 0x4bc   :  { %v1002_v63 = vpop.permute.xlu1 %1001  ;;  %v1429_v1 = vpack.c.bf16 %v979_v42, %v945_v26  ;;  %v1430_v62 = vpack.c.bf16 %v980_v34, %v946_v37 }
 0x4bd   :  { %v1008_v36 = vsel %vm493_vm8, %v1002_v63, %v1004_v43  ;;  %v1009_v44 = vsel %vm493_vm8, %v1000_v22, %v1002_v63 }
 0x4be   :  { %v1011_v40 = vmul.f32 %v1803_v38, %v1009_v44  ;;  %v1012_v0 = vmul.f32 %v1817_v31, %v1008_v36  ;;  %1204 = vmatprep.subr.bf16.mxu1 %v1430_v62  ;;  %v742_v31 = vld [vmem:[%s2047_s2] sm:$0x3] }
 0x4bf   :  { %1205 = vmatpush1.bf16.msra.mxu1 %v1429_v1 }
 0x4c0   :  { %v1006_v9 = vpop.permute.xlu1 %1005  ;;  %v1431_v30 = vpack.c.bf16 %v1012_v0, %v1012_v0  ;;  %v1432_v16 = vpack.c.bf16 %v1011_v40, %v1011_v40 }
 0x4c1   :  { %v1007_v52 = vsel %vm493_vm8, %v1004_v43, %v1006_v9  ;;  %v1010_v35 = vsel %vm493_vm8, %v1006_v9, %v1000_v22 }
 0x4c2   :  { %v1013_v23 = vmul.f32 %v1822_v32, %v1007_v52  ;;  %v1014_v47 = vmul.f32 %v1808_v54, %v1010_v35  ;;  %1339 = vmatprep.subr.msk.bf16.mxu0 %vm49_vm0, %v1431_v30  ;;  %v1146_v38 = vsel %vm49_vm0, %v1432_v16, 0 }
 0x4c3   :  { %1166 = vmatpush1.bf16.msra.mxu0 %v1146_v38 }
 0x4c4   :  { %v1433_v7 = vpack.c.bf16 %v1014_v47, %v1014_v47  ;;  %v1434_v50 = vpack.c.bf16 %v1013_v23, %v1013_v23 }
 0x4c6   :  { %1341 = vmatprep.subr.msk.bf16.mxu1 %vm49_vm0, %v1433_v7  ;;  %1340 = vmatmul.mubr.msk.bf16.vlgmr.msra.gmra.mrb[4].mxu0 %vm1141_vm11, %v742_v31  ;;  %v1152_v32 = vsel %vm49_vm0, %v1434_v50, 0 }
 0x4c7   :  { %1207 = vmatpush1.bf16.msra.mxu1 %v1152_v32 }
 0x4ca   :  { %1342 = vmatmul.mubr.msk.bf16.vlgmr.msra.gmra.mrb[4].mxu1 %vm1141_vm11, %v742_v31 }
 0x599   :  { %v1191_v54 = vpop.f32.mrb[4].mxu0 }
 0x59a   :  { %v1239_v48 = vmax.f32 %v1191_v54, 0.0  ;;  %v1193_v11 = vpop.f32.mrb[5].mxu0 }
 0x59b   :  { %v1240_v13 = vmax.f32 %v1193_v11, 0.0  ;;  %v1195_v21 = vpop.f32.mrb[6].mxu0 }
 0x59c   :  { %v1243_v8 = vadd.f32 %v1413_v12, %v1239_v48  ;;  %v1196_v14 = vpop.f32.mrb[7].mxu0 }
 0x59d   :  { %v1244_v24 = vadd.f32 %v1240_v13, %v1495_v2  ;;  %v1232_v10 = vpop.f32.mrb[4].mxu1 }
 0x59e   :  { %v1241_v18 = vmax.f32 %v1232_v10, 0.0  ;;  %v1234_v33 = vpop.f32.mrb[5].mxu1 }
 0x59f   :  { %v1249_v19 = vcombine.low %v1243_v8, %v1244_v24  ;;  %v1242_v25 = vmax.f32 %v1234_v33, 0.0  ;;  %v1236_v27 = vpop.f32.mrb[6].mxu1 }
 0x5a0   :  { %v1245_v41 = vadd.f32 %v1414_v56, %v1241_v18  ;;  %v1237_v55 = vpop.f32.mrb[7].mxu1 }
 0x5a1   :  { %1251 = vst [vmem:[%s2048_s8] sm:$0xff] %v1249_v19  ;;  %v1246_v15 = vadd.f32 %v1242_v25, %v1497_v3 }
 0x5a3   :  { %v1254_v49 = vcombine.low %v1245_v41, %v1246_v15 }
 0x5a5   :  { %1343 = vst [vmem:[%s2048_s8 + $0x8] sm:$0xff] %v1254_v49 }

</bundles_post_ra>
